<compile_context>
chip_gen: v7x
topology: tpu7x:2x2x1
jax: 0.10.0
libtpu: 0.0.40
codegen_flags: <defaults>
</compile_context>

<pallas_src>
import jax
import jax.numpy as jnp
from jax.experimental import pallas as pl
from jax.experimental.pallas import tpu as pltpu

HIDDEN = 64
LANE = 128  # vreg lane width (used only for VMEM-budget accounting)


def _round_up(n, m):
    return (n + m - 1) // m * m


def policy_net_kernel(x_ref, w1_ref, w2_ref, w3_ref, b12_ref, b3_ref, out_ref):
    # x_ref:   (TB, in_dim)    f32  -- batch tile, un-padded features
    # w1_ref:  (in_dim, 64)    bf16 -- VMEM-resident
    # w2_ref:  (64, 64)        bf16 -- VMEM-resident
    # w3_ref:  (64, out_dim)   bf16 -- VMEM-resident (only real output columns)
    # b12_ref: (2, 64)         f32  -- [b1; b2]
    # b3_ref:  (1, out_dim)    f32
    # out_ref: (TB, out_dim)   f32  -- only the real logits are written back
    x = x_ref[...].astype(jnp.bfloat16)

    # fc1 + relu  (bf16 operands, f32 accumulate; bias/relu in f32, pack late)
    h = jnp.dot(x, w1_ref[...], preferred_element_type=jnp.float32) + b12_ref[0:1, :]
    h = jnp.maximum(h, 0.0).astype(jnp.bfloat16)

    # fc2 + relu
    h = jnp.dot(h, w2_ref[...], preferred_element_type=jnp.float32) + b12_ref[1:2, :]
    h = jnp.maximum(h, 0.0).astype(jnp.bfloat16)

    # fc3 (logits)
    out = jnp.dot(h, w3_ref[...], preferred_element_type=jnp.float32) + b3_ref[...]
    out_ref[...] = out


def prepare_params(params):
    """Cast weights to bf16 (f32 accumulation happens in the kernel) and stack the two
    hidden-layer biases.  No zero padding anywhere: fc1 contracts over the true
    input_dim and fc3 produces only the true out_dim columns."""
    W1 = params["w1"].astype(jnp.bfloat16)                              # (in_dim, 64)
    W2 = params["w2"].astype(jnp.bfloat16)                              # (64, 64)
    W3 = params["w3"].astype(jnp.bfloat16)                              # (64, out_dim)
    B12 = jnp.stack([params["b1"], params["b2"]]).astype(jnp.float32)   # (2, 64)
    B3 = params["b3"].reshape(1, -1).astype(jnp.float32)                # (1, out_dim)
    return W1, W2, W3, B12, B3


def _choose_batch_tile(batch, max_batch_tile):
    if batch <= max_batch_tile:
        # One tile: splitting a small batch across TensorCores just pays the
        # ~0.35 us per-grid-step overhead twice for almost no traffic per step.
        return _round_up(max(batch, 8), 8)
    # Large batch: >= 2 tiles (so the "parallel" axis shards across v7x's two TCs),
    # tiles a multiple of 128 rows to keep blocks/DMAs aligned, capped at max tile.
    return min(max_batch_tile, _round_up(pl.cdiv(batch, 2), 128))


def policy_network_forward(x, W1, W2, W3, B12, B3, *, max_batch_tile=1024):
    """x: (batch, input_dim) f32. Returns (batch, output_dim) f32 logits."""
    batch, in_dim = x.shape
    hidden, out_dim = W3.shape
    assert W1.shape == (in_dim, hidden) and W2.shape == (hidden, hidden)

    TB = _choose_batch_tile(batch, max_batch_tile)
    Bp = _round_up(batch, TB)
    grid = (Bp // TB,)

    if Bp != batch:  # pad rows only when needed; padded rows are sliced off below
        x = jnp.pad(x, ((0, Bp - batch), (0, 0)))

    # VMEM budget: lane-padded (128-wide) double-buffered x/out tiles plus generous
    # room for the in-kernel f32/bf16 hidden intermediates and the resident params.
    # 2x headroom, floor at the 32 MiB scoped default, cap at 48 MiB (< v7x's 64 MiB).
    tile_bytes = TB * LANE * 4
    vmem_est = (2 * tile_bytes          # x tiles (double buffered, lane padded)
                + 2 * tile_bytes        # out tiles (double buffered, lane padded)
                + 4 * tile_bytes        # hidden intermediates (f32 + bf16 copies)
                + (256 << 10))          # weights, biases, misc
    vmem_limit = int(min(48 << 20, max(32 << 20, 2 * vmem_est)))

    out = pl.pallas_call(
        policy_net_kernel,
        out_shape=jax.ShapeDtypeStruct((Bp, out_dim), jnp.float32),
        grid=grid,
        in_specs=[
            pl.BlockSpec((TB, in_dim), lambda i: (i, 0)),        # x: streamed over batch
            pl.BlockSpec((in_dim, hidden), lambda i: (0, 0)),    # w1: VMEM-resident
            pl.BlockSpec((hidden, hidden), lambda i: (0, 0)),    # w2: VMEM-resident
            pl.BlockSpec((hidden, out_dim), lambda i: (0, 0)),   # w3: VMEM-resident
            pl.BlockSpec((2, hidden), lambda i: (0, 0)),         # b1, b2
            pl.BlockSpec((1, out_dim), lambda i: (0, 0)),        # b3
        ],
        out_specs=pl.BlockSpec((TB, out_dim), lambda i: (i, 0)),
        compiler_params=pltpu.CompilerParams(
            dimension_semantics=("parallel",),   # batch tiles shard across v7x's 2 TCs
            vmem_limit_bytes=vmem_limit,
        ),
    )(x, W1, W2, W3, B12, B3)

    return out[:batch]


def init_params(key, input_dim, output_dim, hidden=HIDDEN):
    """Deterministic synthetic init (uniform fan-in, like PyTorch's nn.Linear default)."""
    ks = jax.random.split(key, 6)

    def lin(kw, kb, fan_in, fan_out):
        bound = 1.0 / jnp.sqrt(fan_in)
        w = jax.random.uniform(kw, (fan_in, fan_out), jnp.float32, -bound, bound)
        b = jax.random.uniform(kb, (fan_out,), jnp.float32, -bound, bound)
        return w, b

    w1, b1 = lin(ks[0], ks[1], input_dim, hidden)
    w2, b2 = lin(ks[2], ks[3], hidden, hidden)
    w3, b3 = lin(ks[4], ks[5], hidden, output_dim)
    return {"w1": w1, "b1": b1, "w2": w2, "b2": b2, "w3": w3, "b3": b3}


def _ref_bf16(x, p):
    """Same bf16-operand / f32-accumulate math as the kernel (tight check)."""
    xb = x.astype(jnp.bfloat16)
    h = jnp.maximum(jnp.dot(xb, p["w1"].astype(jnp.bfloat16),
                            preferred_element_type=jnp.float32) + p["b1"], 0.0)
    h = jnp.maximum(jnp.dot(h.astype(jnp.bfloat16), p["w2"].astype(jnp.bfloat16),
                            preferred_element_type=jnp.float32) + p["b2"], 0.0)
    return jnp.dot(h.astype(jnp.bfloat16), p["w3"].astype(jnp.bfloat16),
                   preferred_element_type=jnp.float32) + p["b3"]


def _ref_f32(x, p):
    """Full-f32 PyTorch-equivalent forward."""
    h = jnp.maximum(x @ p["w1"] + p["b1"], 0.0)
    h = jnp.maximum(h @ p["w2"] + p["b2"], 0.0)
    return h @ p["w3"] + p["b3"]


if __name__ == "__main__":
    key = jax.random.PRNGKey(0)
    k_x, k_p, k_x2 = jax.random.split(key, 3)

    batch = 8
    input_dim = 16   # state dimension
    output_dim = 4   # number of actions

    x = jax.random.normal(k_x, (batch, input_dim), jnp.float32)
    params = init_params(k_p, input_dim, output_dim)
    W1, W2, W3, B12, B3 = prepare_params(params)

    # Small-batch path (single grid step).
    out = jax.block_until_ready(policy_network_forward(x, W1, W2, W3, B12, B3))
    assert out.shape == (batch, output_dim)
    assert jnp.allclose(out, _ref_bf16(x, params), atol=2e-3, rtol=2e-3)
    assert jnp.allclose(out, _ref_f32(x, params), atol=5e-2, rtol=5e-2)

    # Multi-tile / padded-batch path (grid > 1, batch axis sharded across v7x TCs).
    big_batch = 2304
    x_big = jax.random.normal(k_x2, (big_batch, input_dim), jnp.float32)
    out_big = jax.block_until_ready(policy_network_forward(x_big, W1, W2, W3, B12, B3))
    assert out_big.shape == (big_batch, output_dim)
    assert jnp.allclose(out_big, _ref_bf16(x_big, params), atol=2e-3, rtol=2e-3)
    assert jnp.allclose(out_big, _ref_f32(x_big, params), atol=5e-2, rtol=5e-2)

    print("KERNEL_OK")
</pallas_src>

<mosaic_0001>
module attributes {stable_mosaic.version = 11 : i64} {
  func.func @policy_net_kernel(%arg0: i32, %arg1: memref<8x16xf32, #tpu.memory_space<vmem>>, %arg2: memref<16x64xbf16, #tpu.memory_space<vmem>>, %arg3: memref<64x64xbf16, #tpu.memory_space<vmem>>, %arg4: memref<64x4xbf16, #tpu.memory_space<vmem>>, %arg5: memref<2x64xf32, #tpu.memory_space<vmem>>, %arg6: memref<1x4xf32, #tpu.memory_space<vmem>>, %arg7: memref<8x4xf32, #tpu.memory_space<vmem>>) attributes {dimension_semantics = [#tpu.dimension_semantics<parallel>], iteration_bounds = array<i64: 1>, scalar_prefetch = 0 : i64, scratch_operands = 0 : i64, tpu.core_type = #tpu.core_type<tc>, window_params = [{transform_indices = @transform_0, window_bounds = array<i64: 8, 16>}, {pipeline_mode = #tpu.pipeline_mode<synchronous>, transform_indices = @transform_1, window_bounds = array<i64: 16, 64>}, {pipeline_mode = #tpu.pipeline_mode<synchronous>, transform_indices = @transform_2, window_bounds = array<i64: 64, 64>}, {pipeline_mode = #tpu.pipeline_mode<synchronous>, transform_indices = @transform_3, window_bounds = array<i64: 64, 4>}, {pipeline_mode = #tpu.pipeline_mode<synchronous>, transform_indices = @transform_4, window_bounds = array<i64: 2, 64>}, {pipeline_mode = #tpu.pipeline_mode<synchronous>, transform_indices = @transform_5, window_bounds = array<i64: 1, 4>}, {transform_indices = @transform_6, window_bounds = array<i64: 8, 4>}]} {
    %c0 = arith.constant 0 : index
    %c0_0 = arith.constant 0 : index
    %0 = vector.load %arg1[%c0, %c0_0] : memref<8x16xf32, #tpu.memory_space<vmem>>, vector<8x16xf32>
    %1 = arith.truncf %0 : vector<8x16xf32> to vector<8x16xbf16>
    %c0_1 = arith.constant 0 : index
    %c0_2 = arith.constant 0 : index
    %2 = vector.load %arg2[%c0_1, %c0_2] : memref<16x64xbf16, #tpu.memory_space<vmem>>, vector<16x64xbf16>
    %cst = arith.constant dense<0.000000e+00> : vector<8x64xf32>
    %3 = tpu.matmul %1, %2, %cst {dimension_numbers = #tpu.dot_dimension_numbers<[1], [0], [0], [1], [0, 0, 1, 1], [], []>} : vector<8x16xbf16>, vector<16x64xbf16>, vector<8x64xf32> -> vector<8x64xf32>
    %c0_3 = arith.constant 0 : index
    %c0_4 = arith.constant 0 : index
    %4 = vector.load %arg5[%c0_3, %c0_4] : memref<2x64xf32, #tpu.memory_space<vmem>>, vector<1x64xf32>
    %5 = vector.broadcast %4 : vector<1x64xf32> to vector<8x64xf32>
    %6 = arith.addf %3, %5 : vector<8x64xf32>
    %cst_5 = arith.constant 0.000000e+00 : f32
    %7 = vector.broadcast %cst_5 : f32 to vector<8x64xf32>
    %8 = arith.maximumf %6, %7 : vector<8x64xf32>
    %9 = arith.truncf %8 : vector<8x64xf32> to vector<8x64xbf16>
    %c0_6 = arith.constant 0 : index
    %c0_7 = arith.constant 0 : index
    %10 = vector.load %arg3[%c0_6, %c0_7] : memref<64x64xbf16, #tpu.memory_space<vmem>>, vector<64x64xbf16>
    %cst_8 = arith.constant dense<0.000000e+00> : vector<8x64xf32>
    %11 = tpu.matmul %9, %10, %cst_8 {dimension_numbers = #tpu.dot_dimension_numbers<[1], [0], [0], [1], [0, 0, 1, 1], [], []>} : vector<8x64xbf16>, vector<64x64xbf16>, vector<8x64xf32> -> vector<8x64xf32>
    %c1 = arith.constant 1 : index
    %c0_9 = arith.constant 0 : index
    %12 = vector.load %arg5[%c1, %c0_9] : memref<2x64xf32, #tpu.memory_space<vmem>>, vector<1x64xf32>
    %13 = vector.broadcast %12 : vector<1x64xf32> to vector<8x64xf32>
    %14 = arith.addf %11, %13 : vector<8x64xf32>
    %cst_10 = arith.constant 0.000000e+00 : f32
    %15 = vector.broadcast %cst_10 : f32 to vector<8x64xf32>
    %16 = arith.maximumf %14, %15 : vector<8x64xf32>
    %17 = arith.truncf %16 : vector<8x64xf32> to vector<8x64xbf16>
    %c0_11 = arith.constant 0 : index
    %c0_12 = arith.constant 0 : index
    %18 = vector.load %arg4[%c0_11, %c0_12] : memref<64x4xbf16, #tpu.memory_space<vmem>>, vector<64x4xbf16>
    %cst_13 = arith.constant dense<0.000000e+00> : vector<8x4xf32>
    %19 = tpu.matmul %17, %18, %cst_13 {dimension_numbers = #tpu.dot_dimension_numbers<[1], [0], [0], [1], [0, 0, 1, 1], [], []>} : vector<8x64xbf16>, vector<64x4xbf16>, vector<8x4xf32> -> vector<8x4xf32>
    %c0_14 = arith.constant 0 : index
    %c0_15 = arith.constant 0 : index
    %20 = vector.load %arg6[%c0_14, %c0_15] : memref<1x4xf32, #tpu.memory_space<vmem>>, vector<1x4xf32>
    %21 = vector.broadcast %20 : vector<1x4xf32> to vector<8x4xf32>
    %22 = arith.addf %19, %21 : vector<8x4xf32>
    %c0_16 = arith.constant 0 : index
    %c0_17 = arith.constant 0 : index
    %23 = vector.load %arg7[%c0_16, %c0_17] : memref<8x4xf32, #tpu.memory_space<vmem>>, vector<8x4xf32>
    tpu.vector_store %arg7[%c0_16, %c0_17], %22 {strides = array<i32>} : memref<8x4xf32, #tpu.memory_space<vmem>>, vector<8x4xf32>,
    return
  }
  func.func @transform_0(%arg0: i32) -> (i32, i32) {
    %c0_i32 = arith.constant 0 : i32
    %c0_i32_0 = arith.constant 0 : i32
    return %arg0, %c0_i32 : i32, i32
  }
  func.func @transform_1(%arg0: i32) -> (i32, i32) {
    %c0_i32 = arith.constant 0 : i32
    %c0_i32_0 = arith.constant 0 : i32
    %c0_i32_1 = arith.constant 0 : i32
    return %c0_i32, %c0_i32_0 : i32, i32
  }
  func.func @transform_2(%arg0: i32) -> (i32, i32) {
    %c0_i32 = arith.constant 0 : i32
    %c0_i32_0 = arith.constant 0 : i32
    %c0_i32_1 = arith.constant 0 : i32
    return %c0_i32, %c0_i32_0 : i32, i32
  }
  func.func @transform_3(%arg0: i32) -> (i32, i32) {
    %c0_i32 = arith.constant 0 : i32
    %c0_i32_0 = arith.constant 0 : i32
    %c0_i32_1 = arith.constant 0 : i32
    return %c0_i32, %c0_i32_0 : i32, i32
  }
  func.func @transform_4(%arg0: i32) -> (i32, i32) {
    %c0_i32 = arith.constant 0 : i32
    %c0_i32_0 = arith.constant 0 : i32
    %c0_i32_1 = arith.constant 0 : i32
    return %c0_i32, %c0_i32_0 : i32, i32
  }
  func.func @transform_5(%arg0: i32) -> (i32, i32) {
    %c0_i32 = arith.constant 0 : i32
    %c0_i32_0 = arith.constant 0 : i32
    %c0_i32_1 = arith.constant 0 : i32
    return %c0_i32, %c0_i32_0 : i32, i32
  }
  func.func @transform_6(%arg0: i32) -> (i32, i32) {
    %c0_i32 = arith.constant 0 : i32
    %c0_i32_0 = arith.constant 0 : i32
    return %arg0, %c0_i32 : i32, i32
  }
}

</mosaic_0001>

<bundles_post_ra>
// kernel: tpu_custom_call.1
= control target key start
LH: loop header
LB: loop body
LE: loop exit
PB: predicated region body
PF: predicated region fallthrough
CT: control target
= control target key end

     0   :  { %11 = vsyncpa [#allocation3], 0  ;;  %s366_s21 = smov [#allocation2]   ;;  %s459_s0 = inlined_call_operand.vmem [shape: f32[8,16], index: 0, kind: input, shape index: {}]   ;;  %s460_s1 = inlined_call_operand.hbm [shape: bf16[16,64], index: 1, kind: input, shape index: {}]   ;;  %s461_s2 = inlined_call_operand.vmem [shape: bf16[64,64], index: 2, kind: input, shape index: {}]   ;;  %s462_s3 = inlined_call_operand.vmem [shape: bf16[64,4], index: 3, kind: input, shape index: {}]   ;;  %s463_s4 = inlined_call_operand.vmem [shape: f32[2,64], index: 4, kind: input, shape index: {}]   ;;  %s464_s5 = inlined_call_operand.vmem [shape: f32[1,4], index: 5, kind: input, shape index: {}]   ;;  %s465_s6 = inlined_call_operand.vmem [shape: f32[8,4], index: 6, kind: output, shape index: {}]  }
   0x1   :  { %s19_s22 = sshll.u32 %s366_s21, 4  ;;  %s342_s25 = scalar_lea.hbm %s460_s1, 128  ;;  %s20_s22 = int_to_ptr.vmem [resolvable:$true] %s19_s22 }
   0x2   :  { %p343_p0 = scmp.ne.s32.totalorder %s460_s1, %s342_s25  ;;  %p346_p1 = scmp.lt.u32.totalorder %s342_s25, %s460_s1 }
   0x4   :  { %p348_p2 = pnand %p346_p1, %p343_p0 }
   0x6   :  { %351 = shalt.err (!%p348_p2)
}
   0x7   :  { %s352_s30 = scalar_lea.vmem %s20_s22, 128  ;;  %p357_p4 = scmp.lt.s32.totalorder %s20_s22, %s20_s22 }
   0x8   :  { %p353_p3 = scmp.ne.s32.totalorder %s20_s22, %s352_s30  ;;  %p358_p5 = scmp.lt.s32.totalorder %s352_s30, %s352_s30 }
   0xa   :  { %p359_p6 = por %p358_p5, %p357_p4 }
   0xc   :  { %p360_p7 = pnand %p359_p6, %p353_p3 }
   0xe   :  { %363 = shalt.err (!%p360_p7)
}
   0xf   :  { %s367_s7 = smov 64   ;;  %s368_s8 = smov 4  }
  0x10   :  { %25 = dma.hbm_to_vmem [thread:$0]  %s460_s1, 128, %s20_s22, [#allocation3], %s367_s7, %s367_s7, %s368_s8  }
  0x11   :  { %364 = dma.done.wait [#allocation3], 128  }
  0x12   :  { %365 = vsyncadd [#allocation3], 4294967168  ;;  %v369_v0 = vmov 0.0   ;;  %vm370_vm0 = vmmov 0   ;;  %v333_v1 = vld [vmem:[#allocation2] sm:$0xff]   ;;  %vm53_vm1 = vcmask 130048  }
  0x13   :  { %298 = vmatprep.subr.bf16.mxu0 %v369_v0  ;;  %300 = vmatprep.mubr.msk.bf16.mxu0 %vm370_vm0, %v369_v0  ;;  %v38_v2 = vld [vmem:[%s459_s0] sm:$0xff]  ;;  %v335_v5 = vld [vmem:[%s461_s2 + $0x8] sm:$0xff]   ;;  %v336_v6 = vld [vmem:[%s461_s2 + $0x10] sm:$0xff]   ;;  %vm136_vm2 = vcmask 523264   ;;  %vm264_vm3 = vcmask 31744  }
  0x14   :  { %304 = vmatprep.subr.bf16.mxu1 %v369_v0  ;;  %312 = vmatprep.mubr.msk.bf16.mxu1 %vm370_vm0, %v369_v0  ;;  %v39_v3 = vpack.c.bf16 %v38_v2, %v38_v2  ;;  %v334_v4 = vld [vmem:[%s461_s2] sm:$0xff]   ;;  %v337_v7 = vld [vmem:[%s461_s2 + $0x18] sm:$0xff]   ;;  %v339_v9 = vld [vmem:[%s462_s3 + $0x8] sm:$0xff]  }
  0x15   :  { %299 = vmatpush3.bf16.msra.mxu0 %v333_v1  ;;  %305 = vmatpush3.bf16.msra.mxu1 %v334_v4  ;;  %v338_v8 = vld [vmem:[%s462_s3] sm:$0xff]   ;;  %v340_v18 = vld [vmem:[%s462_s3 + $0x10] sm:$0xff]   ;;  %v341_v19 = vld [vmem:[%s462_s3 + $0x18] sm:$0xff]  }
  0x16   :  { %316 = vmatprep.subr.bf16.mxu0 %v369_v0  ;;  %306 = vmatprep.subr.bf16.mxu1 %v369_v0  ;;  %v271_v10 = vld [vmem:[%s463_s4] ss:$0 sm:$0xff]  ;;  %v274_v20 = vld [vmem:[%s463_s4 + $0x1] ss:$0 sm:$0xff] }
  0x17   :  { %v280_v28 = vld [vmem:[%s464_s5] ss:$0 sm:$0xff] }
  0x18   :  { %301 = vmatmul.mubr.msk.bf16.vlgmr.msra.gmra.mrb[0].mxu0 %vm53_vm1, %v39_v3 }
  0x19   :  { %324 = vmatprep.mubr.msk.bf16.mxu0 %vm370_vm0, %v369_v0  ;;  %307 = vmatpush3.bf16.msra.mxu1 %v335_v5 }
  0x1a   :  { %308 = vmatprep.subr.bf16.mxu1 %v369_v0  ;;  %317 = vmatpush3.bf16.msra.mxu0 %v338_v8 }
  0x1b   :  { %318 = vmatprep.subr.bf16.mxu0 %v369_v0 }
  0x1d   :  { %309 = vmatpush3.bf16.msra.mxu1 %v336_v6 }
  0x1e   :  { %310 = vmatprep.subr.bf16.mxu1 %v369_v0  ;;  %319 = vmatpush3.bf16.msra.mxu0 %v339_v9 }
  0x1f   :  { %320 = vmatprep.subr.bf16.mxu0 %v369_v0 }
  0x21   :  { %311 = vmatpush3.bf16.msra.mxu1 %v337_v7 }
  0x22   :  { %321 = vmatpush3.bf16.msra.mxu0 %v340_v18 }
  0x23   :  { %322 = vmatprep.subr.bf16.mxu0 %v369_v0 }
  0x26   :  { %323 = vmatpush3.bf16.msra.mxu0 %v341_v19 }
  0xeb   :  { %v91_v11 = vpop.f32.mrb[0].mxu0 }
  0xec   :  { %v92_v12 = vadd.f32 %v271_v10, %v91_v11  ;;  %v302_v13 = vpop.f32.mrb[1].mxu0 }
  0xed   :  { %v94_v14 = vpop.f32.mrb[2].mxu0 }
  0xee   :  { %v97_v15 = vmax.f32 %v92_v12, 0.0  ;;  %v303_v16 = vpop.f32.mrb[3].mxu0 }
  0xf0   :  { %v98_v17 = vpack.c.bf16 %v97_v15, %v97_v15 }
  0xf2   :  { %313 = vmatmul.mubr.msk.bf16.vlgmr.msra.gmra.mrb[0].mxu1 %vm136_vm2, %v98_v17 }
 0x1c5   :  { %v174_v21 = vpop.f32.mrb[0].mxu1 }
 0x1c6   :  { %v175_v22 = vadd.f32 %v274_v20, %v174_v21  ;;  %v314_v23 = vpop.f32.mrb[1].mxu1 }
 0x1c7   :  { %v177_v24 = vpop.f32.mrb[2].mxu1 }
 0x1c8   :  { %v180_v25 = vmax.f32 %v175_v22, 0.0  ;;  %v315_v26 = vpop.f32.mrb[3].mxu1 }
 0x1ca   :  { %v181_v27 = vpack.c.bf16 %v180_v25, %v180_v25 }
 0x1cc   :  { %325 = vmatmul.mubr.msk.bf16.vlgmr.msra.gmra.mrb[4].mxu0 %vm136_vm2, %v181_v27 }
 0x29f   :  { %v258_v29 = vpop.f32.mrb[4].mxu0 }
 0x2a0   :  { %v259_v30 = vadd.f32 %v280_v28, %v258_v29  ;;  %v326_v31 = vpop.f32.mrb[5].mxu0 }
 0x2a1   :  { %v261_v32 = vpop.f32.mrb[6].mxu0 }
 0x2a2   :  { %265 = vst.msk [vmem:[%s465_s6] sm:$0xff] %vm264_vm3, %v259_v30  ;;  %v327_v33 = vpop.f32.mrb[7].mxu0 }
 0x2a3   :  { %270 = vsyncpa [#allocation3], 1 }

</bundles_post_ra>
